<compile_context>
chip_gen: v7x
topology: tpu7x:2x2x1
jax: 0.10.0
libtpu: 0.0.40
codegen_flags: <defaults>
</compile_context>

<pallas_src>
import jax
import jax.numpy as jnp
from jax.experimental import pallas as pl
from jax.experimental.pallas import tpu as pltpu


# ----------------------------------------------------------------------------
# Sizing helpers
# ----------------------------------------------------------------------------

def _round_up(x, m):
    return ((x + m - 1) // m) * m


def _vmem_capacity_bytes():
    try:
        return int(pltpu.get_tpu_info().vmem_capacity_bytes)
    except Exception:
        return 64 * 1024 * 1024          # conservative (v7x per-core VMEM)


def _vmem_limit(vmem_cap):
    # Raise the scoped-VMEM limit above the 16/32 MiB defaults, but never above
    # ~3/4 of physical (leaves headroom for Mosaic internal scratch).
    return int(min(64 * 1024 * 1024, (vmem_cap * 3) // 4))


def _plan_1step(n, bytes_per_elem_streams, vmem_cap):
    """Pick (TD, rows, padded_n, TB) for a flat n-element elementwise kernel."""
    if n % 128 == 0:
        # Common case: no padding at all (reshape is a bitcast).
        td = 1024
        while td > 128 and n % td != 0:
            td //= 2
        padded_n = n
    else:
        # Ragged: one unavoidable pad copy; keep lanes wide.
        padded_n = _round_up(n, 128)
        if padded_n >= 1024:
            padded_n = _round_up(n, 1024)
            td = 1024
        else:
            td = padded_n
    rows = padded_n // td

    # Target ~4 MiB per f32 stream per block; shrink to fit the VMEM budget
    # (all streams, double-buffered).
    tb = max(8, min(1024, ((1 << 20) // td) // 8 * 8))
    budget = int(0.8 * _vmem_limit(vmem_cap))
    while tb > 8 and 2 * tb * td * bytes_per_elem_streams > budget:
        tb //= 2
    if rows <= tb:
        tb = rows                        # single full-extent block (always legal)
    return td, rows, padded_n, tb


# ----------------------------------------------------------------------------
# Single-step LIF forward (matches LIFNeuron.forward for one call)
# ----------------------------------------------------------------------------

def make_lif_forward(tau_in, tau_lk, dt, vth, v_reset, spike_dtype=None):
    """Builds a jitted single-step LIF forward: (v, v_inject) -> (spike, v_new).

    spike_dtype=None -> spikes come back in the input dtype (float32 matches the
    PyTorch module exactly); bf16/int8 are lossless alternatives since spikes
    are exactly {0, 1}.
    """
    decay = float(1.0 - float(tau_lk) * float(dt))   # v_new = v*decay + inj*gain
    gain = float(float(tau_in) * float(dt))
    vth_f = float(vth)
    v_reset_f = float(v_reset)

    def lif_kernel(v_ref, inj_ref, spike_ref, v_out_ref):
        v_new = (v_ref[...].astype(jnp.float32) * decay
                 + inj_ref[...].astype(jnp.float32) * gain)
        fired = v_new > vth_f
        spike_ref[...] = fired.astype(spike_ref.dtype)
        v_out_ref[...] = jnp.where(fired, jnp.float32(v_reset_f), v_new).astype(v_out_ref.dtype)

    def lif_forward(v, v_inject):
        assert v.shape == v_inject.shape and v.dtype == v_inject.dtype
        shape = v.shape
        n = int(v.size)
        sp_dtype = jnp.dtype(spike_dtype) if spike_dtype is not None else jnp.dtype(v.dtype)
        in_bytes = jnp.dtype(v.dtype).itemsize
        bpe = 3 * in_bytes + sp_dtype.itemsize        # v in, inj in, v out, spike out

        vmem_cap = _vmem_capacity_bytes()
        td, rows, padded_n, tb = _plan_1step(n, bpe, vmem_cap)

        v_flat = v.reshape(-1)
        inj_flat = v_inject.reshape(-1)
        if padded_n != n:                             # ragged fallback only
            v_flat = jnp.pad(v_flat, (0, padded_n - n))
            inj_flat = jnp.pad(inj_flat, (0, padded_n - n))
        v2d = v_flat.reshape(rows, td)                # bitcast (row-major contiguous)
        inj2d = inj_flat.reshape(rows, td)

        blk = pl.BlockSpec((tb, td), lambda i: (i, 0))
        spike2d, vout2d = pl.pallas_call(
            lif_kernel,
            out_shape=(
                jax.ShapeDtypeStruct((rows, td), sp_dtype),
                jax.ShapeDtypeStruct((rows, td), v.dtype),
            ),
            grid=(pl.cdiv(rows, tb),),
            in_specs=[blk, blk],
            out_specs=(blk, blk),
            compiler_params=pltpu.CompilerParams(
                dimension_semantics=("parallel",),
                vmem_limit_bytes=_vmem_limit(vmem_cap),
            ),
            cost_estimate=pl.CostEstimate(
                flops=5 * padded_n, transcendentals=0,
                bytes_accessed=bpe * padded_n,
            ),
        )(v2d, inj2d)

        if padded_n != n:
            spike = spike2d.reshape(-1)[:n].reshape(shape)
            v_new = vout2d.reshape(-1)[:n].reshape(shape)
        else:
            spike = spike2d.reshape(shape)
            v_new = vout2d.reshape(shape)
        return spike, v_new

    return jax.jit(lif_forward)


# ----------------------------------------------------------------------------
# Fused multi-timestep rollout: v stays resident in VMEM across T steps
# ----------------------------------------------------------------------------

def make_lif_multistep(tau_in, tau_lk, dt, vth, v_reset, spike_dtype=None):
    """Builds a jitted rollout: (v0[B,D], v_inject[T,B,D]) -> (spike[T,B,D], v_T[B,D]).

    The time axis is the innermost ("arbitrary") grid axis; the membrane
    potential lives in a VMEM scratch for the whole sweep, so only v_inject[t]
    is read and spike[t] written per step (2 streams instead of 4).
    """
    decay = float(1.0 - float(tau_lk) * float(dt))
    gain = float(float(tau_in) * float(dt))
    vth_f = float(vth)
    v_reset_f = float(v_reset)

    def kernel(v0_ref, inj_ref, spike_ref, vT_ref, v_scr):
        t = pl.program_id(1)

        @pl.when(t == 0)
        def _():
            v_scr[...] = v0_ref[...].astype(jnp.float32)

        v_new = v_scr[...] * decay + inj_ref[...].astype(jnp.float32) * gain
        fired = v_new > vth_f
        spike_ref[...] = fired.astype(spike_ref.dtype)
        v_after = jnp.where(fired, jnp.float32(v_reset_f), v_new)
        v_scr[...] = v_after

        @pl.when(t == pl.num_programs(1) - 1)
        def _():
            vT_ref[...] = v_after.astype(vT_ref.dtype)

    def rollout(v0, v_inject_seq):
        T, B, D = v_inject_seq.shape
        assert v0.shape == (B, D) and v0.dtype == v_inject_seq.dtype
        sp_dtype = jnp.dtype(spike_dtype) if spike_dtype is not None else jnp.dtype(v0.dtype)
        in_bytes = jnp.dtype(v0.dtype).itemsize

        dp = _round_up(D, 128)
        if dp != D:                                   # ragged feature dim only
            v0p = jnp.pad(v0, ((0, 0), (0, dp - D)))
            injp = jnp.pad(v_inject_seq, ((0, 0), (0, 0), (0, dp - D)))
        else:
            v0p, injp = v0, v_inject_seq

        vmem_cap = _vmem_capacity_bytes()
        # per-block VMEM: double-buffered v0/inj/spike/vT + one f32 scratch
        per_elem = 2 * (2 * in_bytes + sp_dtype.itemsize + in_bytes) + 4
        tb = min(B, max(8, ((1 << 20) // dp) // 8 * 8))
        budget = int(0.8 * _vmem_limit(vmem_cap))
        while tb > 8 and tb * dp * per_elem > budget:
            tb = max(8, (tb // 2) // 8 * 8)
        # TODO(synk): also tile the feature axis for very large D (currently one
        # row-block spans the full padded feature dim).

        v0_spec = pl.BlockSpec((tb, dp), lambda i, t: (i, 0))
        inj_spec = pl.BlockSpec((None, tb, dp), lambda i, t: (t, i, 0))
        spike_spec = pl.BlockSpec((None, tb, dp), lambda i, t: (t, i, 0))
        vT_spec = pl.BlockSpec((tb, dp), lambda i, t: (i, 0))

        spike_seq, v_T = pl.pallas_call(
            kernel,
            out_shape=(
                jax.ShapeDtypeStruct((T, B, dp), sp_dtype),
                jax.ShapeDtypeStruct((B, dp), v0.dtype),
            ),
            grid=(pl.cdiv(B, tb), T),
            in_specs=[v0_spec, inj_spec],
            out_specs=(spike_spec, vT_spec),
            scratch_shapes=[pltpu.VMEM((tb, dp), jnp.float32)],
            compiler_params=pltpu.CompilerParams(
                dimension_semantics=("parallel", "arbitrary"),
                vmem_limit_bytes=_vmem_limit(vmem_cap),
            ),
            cost_estimate=pl.CostEstimate(
                flops=5 * T * B * dp, transcendentals=0,
                bytes_accessed=T * B * dp * (in_bytes + sp_dtype.itemsize) + 2 * B * dp * in_bytes,
            ),
        )(v0p, injp)

        if dp != D:
            spike_seq = spike_seq[..., :D]
            v_T = v_T[..., :D]
        return spike_seq, v_T

    return jax.jit(rollout)


# ----------------------------------------------------------------------------
# Demo / correctness check
# ----------------------------------------------------------------------------

if __name__ == "__main__":
    # Neuron constants ("extracted from experimental data")
    batch_size = 2
    dim_in = 32
    Rd = 100.0       # device HRS
    Cm = 1.0         # parallel capacitor
    Rs = 1.0         # series resistance
    Vth = 0.5        # threshold voltage
    V_reset = 0.0    # reset voltage
    dt = 0.01        # simulation time step

    tau_in = 1.0 / (Cm * Rs)
    tau_lk = (1.0 / Cm) * (1.0 / Rd + 1.0 / Rs)

    lif_forward = make_lif_forward(tau_in, tau_lk, dt, Vth, V_reset)
    lif_rollout = make_lif_multistep(tau_in, tau_lk, dt, Vth, V_reset)

    key = jax.random.PRNGKey(0)
    k1, k2 = jax.random.split(key, 2)

    # initial membrane potential = V_reset (as in torch.full); random injection
    v0 = jnp.full((batch_size, dim_in), V_reset, dtype=jnp.float32)
    v_inject = jax.random.uniform(
        k1, (batch_size, dim_in), jnp.float32, minval=0.0, maxval=100.0)

    # --- single step ---
    spike, v_new = lif_forward(v0, v_inject)
    jax.block_until_ready((spike, v_new))

    v_ref = v0 + (tau_in * v_inject - tau_lk * v0) * dt
    spike_ref = (v_ref > Vth).astype(jnp.float32)
    v_after_ref = V_reset * spike_ref + v_ref * (1.0 - spike_ref)
    assert spike.shape == (batch_size, dim_in) and v_new.shape == (batch_size, dim_in)
    assert jnp.allclose(spike, spike_ref, atol=1e-5)
    assert jnp.allclose(v_new, v_after_ref, atol=1e-5, rtol=1e-5)

    # --- fused T-step rollout (v resident in VMEM) ---
    T = 8
    inj_seq = jax.random.uniform(
        k2, (T, batch_size, dim_in), jnp.float32, minval=0.0, maxval=100.0)
    spike_seq, v_T = lif_rollout(v0, inj_seq)
    jax.block_until_ready((spike_seq, v_T))

    v_r = v0
    for t in range(T):
        v_r = v_r + (tau_in * inj_seq[t] - tau_lk * v_r) * dt
        s_r = (v_r > Vth).astype(jnp.float32)
        v_r = V_reset * s_r + v_r * (1.0 - s_r)
        assert jnp.allclose(spike_seq[t], s_r, atol=1e-5)
    assert jnp.allclose(v_T, v_r, atol=1e-5, rtol=1e-5)

    print("KERNEL_OK")
</pallas_src>

<mosaic_0001>
module attributes {stable_mosaic.version = 11 : i64} {
  func.func @lif_kernel(%arg0: i32, %arg1: memref<1x128xf32, #tpu.memory_space<vmem>>, %arg2: memref<1x128xf32, #tpu.memory_space<vmem>>, %arg3: memref<1x128xf32, #tpu.memory_space<vmem>>, %arg4: memref<1x128xf32, #tpu.memory_space<vmem>>) attributes {dimension_semantics = [#tpu.dimension_semantics<parallel>], iteration_bounds = array<i64: 1>, scalar_prefetch = 0 : i64, scratch_operands = 0 : i64, tpu.core_type = #tpu.core_type<tc>, window_params = [{transform_indices = @transform_0, window_bounds = array<i64: 1, 128>}, {transform_indices = @transform_1, window_bounds = array<i64: 1, 128>}, {transform_indices = @transform_2, window_bounds = array<i64: 1, 128>}, {transform_indices = @transform_3, window_bounds = array<i64: 1, 128>}]} {
    %c0 = arith.constant 0 : index
    %c0_0 = arith.constant 0 : index
    %0 = vector.load %arg1[%c0, %c0_0] : memref<1x128xf32, #tpu.memory_space<vmem>>, vector<1x128xf32>
    %cst = arith.constant 0.989899992 : f32
    %1 = vector.broadcast %cst : f32 to vector<1x128xf32>
    %2 = arith.mulf %0, %1 : vector<1x128xf32>
    %c0_1 = arith.constant 0 : index
    %c0_2 = arith.constant 0 : index
    %3 = vector.load %arg2[%c0_1, %c0_2] : memref<1x128xf32, #tpu.memory_space<vmem>>, vector<1x128xf32>
    %cst_3 = arith.constant 0.00999999977 : f32
    %4 = vector.broadcast %cst_3 : f32 to vector<1x128xf32>
    %5 = arith.mulf %3, %4 : vector<1x128xf32>
    %6 = arith.addf %2, %5 : vector<1x128xf32>
    %cst_4 = arith.constant 5.000000e-01 : f32
    %7 = vector.broadcast %cst_4 : f32 to vector<1x128xf32>
    %8 = arith.cmpf ogt, %6, %7 : vector<1x128xf32>
    %9 = arith.extui %8 : vector<1x128xi1> to vector<1x128xi32>
    %10 = arith.sitofp %9 : vector<1x128xi32> to vector<1x128xf32>
    %c0_5 = arith.constant 0 : index
    %c0_6 = arith.constant 0 : index
    %11 = vector.load %arg3[%c0_5, %c0_6] : memref<1x128xf32, #tpu.memory_space<vmem>>, vector<1x128xf32>
    tpu.vector_store %arg3[%c0_5, %c0_6], %10 {strides = array<i32>} : memref<1x128xf32, #tpu.memory_space<vmem>>, vector<1x128xf32>,
    %cst_7 = arith.constant 0.000000e+00 : f32
    %12 = vector.broadcast %cst_7 : f32 to vector<1x128xf32>
    %13 = arith.select %8, %12, %6 : vector<1x128xi1>, vector<1x128xf32>
    %c0_8 = arith.constant 0 : index
    %c0_9 = arith.constant 0 : index
    %14 = vector.load %arg4[%c0_8, %c0_9] : memref<1x128xf32, #tpu.memory_space<vmem>>, vector<1x128xf32>
    tpu.vector_store %arg4[%c0_8, %c0_9], %13 {strides = array<i32>} : memref<1x128xf32, #tpu.memory_space<vmem>>, vector<1x128xf32>,
    return
  }
  func.func @transform_0(%arg0: i32) -> (i32, i32) {
    %c0_i32 = arith.constant 0 : i32
    %c0_i32_0 = arith.constant 0 : i32
    return %arg0, %c0_i32 : i32, i32
  }
  func.func @transform_1(%arg0: i32) -> (i32, i32) {
    %c0_i32 = arith.constant 0 : i32
    %c0_i32_0 = arith.constant 0 : i32
    return %arg0, %c0_i32 : i32, i32
  }
  func.func @transform_2(%arg0: i32) -> (i32, i32) {
    %c0_i32 = arith.constant 0 : i32
    %c0_i32_0 = arith.constant 0 : i32
    return %arg0, %c0_i32 : i32, i32
  }
  func.func @transform_3(%arg0: i32) -> (i32, i32) {
    %c0_i32 = arith.constant 0 : i32
    %c0_i32_0 = arith.constant 0 : i32
    return %arg0, %c0_i32 : i32, i32
  }
}

</mosaic_0001>

<bundles_post_ra>
// kernel: lif_forward.1
= control target key start
LH: loop header
LB: loop body
LE: loop exit
PB: predicated region body
PF: predicated region fallthrough
CT: control target
= control target key end

     0   :  { %v34_v5 = vmov 0.0   ;;  %s67_s0 = inlined_call_operand.vmem [shape: f32[1,128], index: 0, kind: input, shape index: {}]   ;;  %s68_s1 = inlined_call_operand.vmem [shape: f32[1,128], index: 1, kind: input, shape index: {}]   ;;  %s69_s2 = inlined_call_operand.vmem [shape: f32[1,128], index: 2, kind: output, shape index: {0}]   ;;  %s70_s3 = inlined_call_operand.vmem [shape: f32[1,128], index: 3, kind: output, shape index: {1}]  }
   0x1   :  { %v13_v0 = vld [vmem:[%s67_s0] sm:$0x1] }
   0x2   :  { %v15_v1 = vld [vmem:[%s68_s1] sm:$0x1]  ;;  %v14_v2 = vmul.f32 0.9899, %v13_v0 }
   0x3   :  { %v16_v3 = vmul.f32 0.01, %v15_v1 }
   0x5   :  { %v17_v4 = vadd.f32 %v16_v3, %v14_v2 }
   0x7   :  { %vm18_vm0 = vcmp.gt.f32.partialorder %v17_v4, 0.5 }
   0x8   :  { %v32_v6 = vsel %vm18_vm0, 1.0, %v34_v5  ;;  %v22_v7 = vsel %vm18_vm0, 0.0, %v17_v4 }
   0x9   :  { %21 = vst [vmem:[%s69_s2] sm:$0x1] %v32_v6  ;;  %23 = vst [vmem:[%s70_s3] sm:$0x1] %v22_v7 }

</bundles_post_ra>
